<compile_context>
chip_gen: v5e
topology: v5e:2x2
jax: 0.10.0
libtpu: 0.0.40
codegen_flags: <defaults>
</compile_context>

<pallas_src>
import math

import jax
import jax.numpy as jnp
from jax import lax
from jax.experimental import pallas as pl
from jax.experimental.pallas import tpu as pltpu


def make_sinusoidal_pe(max_seq_len: int, d_model: int) -> jnp.ndarray:
    """Same construction as the PyTorch module's `pe` buffer: (max_seq_len, d_model) f32."""
    position = jnp.arange(max_seq_len, dtype=jnp.float32)[:, None]            # (L, 1)
    div_term = jnp.exp(jnp.arange(0, d_model, 2, dtype=jnp.float32)
                       * (-math.log(10000.0) / d_model))                      # (D/2,)
    pe = jnp.zeros((max_seq_len, d_model), dtype=jnp.float32)
    pe = pe.at[:, 0::2].set(jnp.sin(position * div_term))
    pe = pe.at[:, 1::2].set(jnp.cos(position * div_term))
    return pe


# ----------------------------------------------------------------------------
# Primary kernel: embedding table resident in VMEM (no manual DMA at all).
# ----------------------------------------------------------------------------
def _embed_add_resident_kernel(ids_ref, tbl_ref, pe_ref, out_ref):
    """One (seq-tile s, batch b) step.

    ids_ref : (B, S) int32 in SMEM (scalar prefetch)
    tbl_ref : (V, D) VMEM — whole table, constant block index => DMA'd once
    pe_ref  : (T, D) VMEM tile — block index constant over inner batch axis
    out_ref : (T, D) VMEM tile (lane-dense), batch dim squeezed
    """
    s = pl.program_id(0)
    b = pl.program_id(1)
    T = out_ref.shape[0]
    base = s * T

    def row(t, carry):
        tok = ids_ref[b, base + t]                       # scalar id from SMEM
        emb = tbl_ref[pl.ds(tok, 1), :]                  # (1, D) dynamic VMEM row read
        out_ref[pl.ds(t, 1), :] = (emb.astype(out_ref.dtype)
                                   + pe_ref[pl.ds(t, 1), :].astype(out_ref.dtype))
        return carry

    # Bounded code size for large T; gather is pure VPU/load-store work.
    lax.fori_loop(0, T, row, 0, unroll=8)


# ----------------------------------------------------------------------------
# Fallback kernel for very large vocabularies: rows gathered from HBM by DMA,
# all copies signal one shared semaphore, one aggregate wait on the full tile.
# ----------------------------------------------------------------------------
def _embed_add_hbm_kernel(ids_ref, emb_hbm, pe_ref, out_ref, emb_buf, sem):
    s = pl.program_id(0)
    b = pl.program_id(1)
    T = out_ref.shape[0]
    base = s * T

    def start_row(t, carry):
        tok = ids_ref[b, base + t]
        pltpu.make_async_copy(emb_hbm.at[pl.ds(tok, 1)],
                              emb_buf.at[pl.ds(t, 1)],
                              sem).start()
        return carry

    lax.fori_loop(0, T, start_row, 0, unroll=8)

    # Aggregate wait: every row copy signaled `sem`; waiting on a descriptor
    # whose destination is the full (T, D) buffer retires all of them at once.
    pltpu.make_async_copy(emb_hbm.at[pl.ds(0, T)], emb_buf, sem).wait()

    # TODO(synk): double-buffer this gather across grid steps (prefetch tile
    # s+1's rows while adding tile s) to hide HBM latency on the big-vocab path.
    out_ref[...] = (emb_buf[...].astype(out_ref.dtype)
                    + pe_ref[...].astype(out_ref.dtype))


def _pick_token_tile(S: int, max_tile: int = 256) -> int:
    """Largest multiple of 8 that divides S, capped at max_tile; else full S."""
    for t in range(min(max_tile, S), 7, -1):
        if t % 8 == 0 and S % t == 0:
            return t
    return S


# Keep total VMEM (table ×2 buffers + pe/out tiles ×2) under ~48 MiB so the
# resident-table path also fits v7x's 64 MiB VMEM with headroom.
_VMEM_TABLE_BUDGET = 48 << 20


def position_and_token_embedding(tokens: jnp.ndarray,
                                 emb_table: jnp.ndarray,
                                 pe_full: jnp.ndarray,
                                 *,
                                 force_hbm_gather: bool = False) -> jnp.ndarray:
    """tokens: (B, S) int; emb_table: (V, D); pe_full: (max_seq_len, D) f32.
    Returns (B, S, D) == embedding(tokens) + pe[:S]  (PyTorch type promotion)."""
    B, S = tokens.shape
    V, D = emb_table.shape
    assert S <= pe_full.shape[0], "sequence longer than max_seq_len"

    pe = pe_full[:S]                                        # (S, D), kept float32
    out_dtype = jnp.result_type(emb_table.dtype, pe.dtype)  # bf16 table + f32 pe -> f32

    T = _pick_token_tile(S)
    n_s = S // T

    # Clamp ids so neither the VMEM row read nor the HBM DMA can go OOB.
    # TODO(synk): for very large B*S, switch ids from full-array scalar
    # prefetch to a blocked (1, T) SMEM input per grid step (SMEM capacity).
    ids = jnp.clip(tokens.astype(jnp.int32), 0, V - 1)      # (B, S)

    esize = emb_table.dtype.itemsize
    osize = jnp.dtype(out_dtype).itemsize
    # Pallas double-buffers inputs/outputs by default — budget for ×2.
    tile_bytes = 2 * T * D * pe.dtype.itemsize + 2 * T * D * osize
    table_bytes = 2 * V * D * esize
    use_resident = (not force_hbm_gather) and (table_bytes + tile_bytes <= _VMEM_TABLE_BUDGET)

    # Tokens are fully independent: both axes parallel; the seq-tile axis
    # leads so v7x's two TensorCores split the larger axis evenly.
    dim_sems = ("parallel", "parallel")

    if use_resident:
        vmem_limit = int(min(max(table_bytes + tile_bytes + (8 << 20), 32 << 20), 56 << 20))
        out = pl.pallas_call(
            _embed_add_resident_kernel,
            out_shape=jax.ShapeDtypeStruct((B, S, D), out_dtype),
            grid_spec=pltpu.PrefetchScalarGridSpec(
                num_scalar_prefetch=1,
                grid=(n_s, B),
                in_specs=[
                    # Whole table, constant block index -> fetched from HBM once.
                    pl.BlockSpec((V, D), lambda s, b, ids: (0, 0)),
                    # PE tile; constant over the inner batch axis -> DMA skipped,
                    # only S*D bytes of PE read in total.
                    pl.BlockSpec((T, D), lambda s, b, ids: (s, 0)),
                ],
                # Lane-dense (T, D) output tile; batch dim squeezed out.
                out_specs=pl.BlockSpec((None, T, D), lambda s, b, ids: (b, s, 0)),
            ),
            compiler_params=pltpu.CompilerParams(
                dimension_semantics=dim_sems,
                vmem_limit_bytes=vmem_limit),
        )(ids, emb_table, pe)
    else:
        # Large-vocab fallback: table stays in HBM, rows gathered manually.
        vmem_limit = int(min(max(tile_bytes + T * D * esize + (8 << 20), 32 << 20), 56 << 20))
        out = pl.pallas_call(
            _embed_add_hbm_kernel,
            out_shape=jax.ShapeDtypeStruct((B, S, D), out_dtype),
            grid_spec=pltpu.PrefetchScalarGridSpec(
                num_scalar_prefetch=1,
                grid=(n_s, B),
                in_specs=[
                    pl.BlockSpec(memory_space=pl.ANY),                     # table in HBM
                    pl.BlockSpec((T, D), lambda s, b, ids: (s, 0)),        # PE tile
                ],
                out_specs=pl.BlockSpec((None, T, D), lambda s, b, ids: (b, s, 0)),
                scratch_shapes=[
                    pltpu.VMEM((T, D), emb_table.dtype),   # gather staging
                    pltpu.SemaphoreType.DMA(()),           # single shared DMA sem
                ],
            ),
            compiler_params=pltpu.CompilerParams(
                dimension_semantics=dim_sems,
                vmem_limit_bytes=vmem_limit),
        )(ids, emb_table, pe)

    return out


if __name__ == "__main__":
    # Small, deterministic configuration (D chosen lane-dense = 128).
    d_model = 128
    max_seq_len = 16
    vocab_size = 64
    batch = 2
    seq = 8

    key = jax.random.PRNGKey(0)
    k_emb, k_tok = jax.random.split(key)

    # nn.Embedding default init: N(0, 1)
    emb_table = jax.random.normal(k_emb, (vocab_size, d_model), dtype=jnp.float32)
    pe_full = make_sinusoidal_pe(max_seq_len, d_model)
    tokens = jax.random.randint(k_tok, (batch, seq), 0, vocab_size, dtype=jnp.int32)

    out = position_and_token_embedding(tokens, emb_table, pe_full)
    out = jax.block_until_ready(out)

    # Pure-JAX reference.
    ref = jnp.take(emb_table, tokens, axis=0) + pe_full[None, :seq, :]
    assert out.shape == (batch, seq, d_model)
    assert out.dtype == ref.dtype
    assert jnp.allclose(out, ref, atol=1e-6), "mismatch vs reference"

    print("KERNEL_OK")
</pallas_src>

<mosaic_0001>
module attributes {stable_mosaic.version = 11 : i64} {
  func.func @_embed_add_resident_kernel(%arg0: i32, %arg1: i32, %arg2: memref<2x8xi32, #tpu.memory_space<smem>>, %arg3: memref<64x128xf32, #tpu.memory_space<vmem>>, %arg4: memref<8x128xf32, #tpu.memory_space<vmem>>, %arg5: memref<1x8x128xf32, #tpu.memory_space<vmem>>) attributes {dimension_semantics = [#tpu.dimension_semantics<parallel>, #tpu.dimension_semantics<parallel>], iteration_bounds = array<i64: 1, 2>, scalar_prefetch = 1 : i64, scratch_operands = 0 : i64, tpu.core_type = #tpu.core_type<tc>, window_params = [{pipeline_mode = #tpu.pipeline_mode<synchronous>, transform_indices = @transform_0, window_bounds = array<i64: 64, 128>}, {transform_indices = @transform_1, window_bounds = array<i64: 8, 128>}, {transform_indices = @transform_2, window_bounds = array<i64: 1, 8, 128>}]} {
    %c8_i32 = arith.constant 8 : i32
    %0 = arith.muli %arg0, %c8_i32 : i32
    %c0_i32 = arith.constant 0 : i32
    %1 = arith.addi %0, %c0_i32 : i32
    %2 = arith.index_cast %arg1 : i32 to index
    %3 = arith.index_cast %1 : i32 to index
    %4 = memref.load %arg2[%2, %3] : memref<2x8xi32, #tpu.memory_space<smem>>
    %5 = arith.index_cast %4 : i32 to index
    %c0 = arith.constant 0 : index
    %6 = vector.load %arg3[%5, %c0] : memref<64x128xf32, #tpu.memory_space<vmem>>, vector<1x128xf32>
    %7 = arith.index_cast %c0_i32 : i32 to index
    %c0_0 = arith.constant 0 : index
    %8 = vector.load %arg4[%7, %c0_0] : memref<8x128xf32, #tpu.memory_space<vmem>>, vector<1x128xf32>
    %9 = arith.addf %6, %8 : vector<1x128xf32>
    %c0_1 = arith.constant 0 : index
    %10 = arith.index_cast %c0_i32 : i32 to index
    %c0_2 = arith.constant 0 : index
    %11 = vector.load %arg5[%c0_1, %10, %c0_2] : memref<1x8x128xf32, #tpu.memory_space<vmem>>, vector<1x1x128xf32>
    %12 = vector.shape_cast %11 : vector<1x1x128xf32> to vector<1x128xf32>
    %13 = vector.shape_cast %9 : vector<1x128xf32> to vector<1x1x128xf32>
    tpu.vector_store %arg5[%c0_1, %10, %c0_2], %13 {strides = array<i32>} : memref<1x8x128xf32, #tpu.memory_space<vmem>>, vector<1x1x128xf32>,
    %c1_i32 = arith.constant 1 : i32
    %14 = arith.addi %0, %c1_i32 : i32
    %15 = arith.index_cast %arg1 : i32 to index
    %16 = arith.index_cast %14 : i32 to index
    %17 = memref.load %arg2[%15, %16] : memref<2x8xi32, #tpu.memory_space<smem>>
    %18 = arith.index_cast %17 : i32 to index
    %c0_3 = arith.constant 0 : index
    %19 = vector.load %arg3[%18, %c0_3] : memref<64x128xf32, #tpu.memory_space<vmem>>, vector<1x128xf32>
    %20 = arith.index_cast %c1_i32 : i32 to index
    %c0_4 = arith.constant 0 : index
    %21 = vector.load %arg4[%20, %c0_4] : memref<8x128xf32, #tpu.memory_space<vmem>>, vector<1x128xf32>
    %22 = arith.addf %19, %21 : vector<1x128xf32>
    %c0_5 = arith.constant 0 : index
    %23 = arith.index_cast %c1_i32 : i32 to index
    %c0_6 = arith.constant 0 : index
    %24 = vector.load %arg5[%c0_5, %23, %c0_6] : memref<1x8x128xf32, #tpu.memory_space<vmem>>, vector<1x1x128xf32>
    %25 = vector.shape_cast %24 : vector<1x1x128xf32> to vector<1x128xf32>
    %26 = vector.shape_cast %22 : vector<1x128xf32> to vector<1x1x128xf32>
    tpu.vector_store %arg5[%c0_5, %23, %c0_6], %26 {strides = array<i32>} : memref<1x8x128xf32, #tpu.memory_space<vmem>>, vector<1x1x128xf32>,
    %c2_i32 = arith.constant 2 : i32
    %27 = arith.addi %0, %c2_i32 : i32
    %28 = arith.index_cast %arg1 : i32 to index
    %29 = arith.index_cast %27 : i32 to index
    %30 = memref.load %arg2[%28, %29] : memref<2x8xi32, #tpu.memory_space<smem>>
    %31 = arith.index_cast %30 : i32 to index
    %c0_7 = arith.constant 0 : index
    %32 = vector.load %arg3[%31, %c0_7] : memref<64x128xf32, #tpu.memory_space<vmem>>, vector<1x128xf32>
    %33 = arith.index_cast %c2_i32 : i32 to index
    %c0_8 = arith.constant 0 : index
    %34 = vector.load %arg4[%33, %c0_8] : memref<8x128xf32, #tpu.memory_space<vmem>>, vector<1x128xf32>
    %35 = arith.addf %32, %34 : vector<1x128xf32>
    %c0_9 = arith.constant 0 : index
    %36 = arith.index_cast %c2_i32 : i32 to index
    %c0_10 = arith.constant 0 : index
    %37 = vector.load %arg5[%c0_9, %36, %c0_10] : memref<1x8x128xf32, #tpu.memory_space<vmem>>, vector<1x1x128xf32>
    %38 = vector.shape_cast %37 : vector<1x1x128xf32> to vector<1x128xf32>
    %39 = vector.shape_cast %35 : vector<1x128xf32> to vector<1x1x128xf32>
    tpu.vector_store %arg5[%c0_9, %36, %c0_10], %39 {strides = array<i32>} : memref<1x8x128xf32, #tpu.memory_space<vmem>>, vector<1x1x128xf32>,
    %c3_i32 = arith.constant 3 : i32
    %40 = arith.addi %0, %c3_i32 : i32
    %41 = arith.index_cast %arg1 : i32 to index
    %42 = arith.index_cast %40 : i32 to index
    %43 = memref.load %arg2[%41, %42] : memref<2x8xi32, #tpu.memory_space<smem>>
    %44 = arith.index_cast %43 : i32 to index
    %c0_11 = arith.constant 0 : index
    %45 = vector.load %arg3[%44, %c0_11] : memref<64x128xf32, #tpu.memory_space<vmem>>, vector<1x128xf32>
    %46 = arith.index_cast %c3_i32 : i32 to index
    %c0_12 = arith.constant 0 : index
    %47 = vector.load %arg4[%46, %c0_12] : memref<8x128xf32, #tpu.memory_space<vmem>>, vector<1x128xf32>
    %48 = arith.addf %45, %47 : vector<1x128xf32>
    %c0_13 = arith.constant 0 : index
    %49 = arith.index_cast %c3_i32 : i32 to index
    %c0_14 = arith.constant 0 : index
    %50 = vector.load %arg5[%c0_13, %49, %c0_14] : memref<1x8x128xf32, #tpu.memory_space<vmem>>, vector<1x1x128xf32>
    %51 = vector.shape_cast %50 : vector<1x1x128xf32> to vector<1x128xf32>
    %52 = vector.shape_cast %48 : vector<1x128xf32> to vector<1x1x128xf32>
    tpu.vector_store %arg5[%c0_13, %49, %c0_14], %52 {strides = array<i32>} : memref<1x8x128xf32, #tpu.memory_space<vmem>>, vector<1x1x128xf32>,
    %c4_i32 = arith.constant 4 : i32
    %53 = arith.addi %0, %c4_i32 : i32
    %54 = arith.index_cast %arg1 : i32 to index
    %55 = arith.index_cast %53 : i32 to index
    %56 = memref.load %arg2[%54, %55] : memref<2x8xi32, #tpu.memory_space<smem>>
    %57 = arith.index_cast %56 : i32 to index
    %c0_15 = arith.constant 0 : index
    %58 = vector.load %arg3[%57, %c0_15] : memref<64x128xf32, #tpu.memory_space<vmem>>, vector<1x128xf32>
    %59 = arith.index_cast %c4_i32 : i32 to index
    %c0_16 = arith.constant 0 : index
    %60 = vector.load %arg4[%59, %c0_16] : memref<8x128xf32, #tpu.memory_space<vmem>>, vector<1x128xf32>
    %61 = arith.addf %58, %60 : vector<1x128xf32>
    %c0_17 = arith.constant 0 : index
    %62 = arith.index_cast %c4_i32 : i32 to index
    %c0_18 = arith.constant 0 : index
    %63 = vector.load %arg5[%c0_17, %62, %c0_18] : memref<1x8x128xf32, #tpu.memory_space<vmem>>, vector<1x1x128xf32>
    %64 = vector.shape_cast %63 : vector<1x1x128xf32> to vector<1x128xf32>
    %65 = vector.shape_cast %61 : vector<1x128xf32> to vector<1x1x128xf32>
    tpu.vector_store %arg5[%c0_17, %62, %c0_18], %65 {strides = array<i32>} : memref<1x8x128xf32, #tpu.memory_space<vmem>>, vector<1x1x128xf32>,
    %c5_i32 = arith.constant 5 : i32
    %66 = arith.addi %0, %c5_i32 : i32
    %67 = arith.index_cast %arg1 : i32 to index
    %68 = arith.index_cast %66 : i32 to index
    %69 = memref.load %arg2[%67, %68] : memref<2x8xi32, #tpu.memory_space<smem>>
    %70 = arith.index_cast %69 : i32 to index
    %c0_19 = arith.constant 0 : index
    %71 = vector.load %arg3[%70, %c0_19] : memref<64x128xf32, #tpu.memory_space<vmem>>, vector<1x128xf32>
    %72 = arith.index_cast %c5_i32 : i32 to index
    %c0_20 = arith.constant 0 : index
    %73 = vector.load %arg4[%72, %c0_20] : memref<8x128xf32, #tpu.memory_space<vmem>>, vector<1x128xf32>
    %74 = arith.addf %71, %73 : vector<1x128xf32>
    %c0_21 = arith.constant 0 : index
    %75 = arith.index_cast %c5_i32 : i32 to index
    %c0_22 = arith.constant 0 : index
    %76 = vector.load %arg5[%c0_21, %75, %c0_22] : memref<1x8x128xf32, #tpu.memory_space<vmem>>, vector<1x1x128xf32>
    %77 = vector.shape_cast %76 : vector<1x1x128xf32> to vector<1x128xf32>
    %78 = vector.shape_cast %74 : vector<1x128xf32> to vector<1x1x128xf32>
    tpu.vector_store %arg5[%c0_21, %75, %c0_22], %78 {strides = array<i32>} : memref<1x8x128xf32, #tpu.memory_space<vmem>>, vector<1x1x128xf32>,
    %c6_i32 = arith.constant 6 : i32
    %79 = arith.addi %0, %c6_i32 : i32
    %80 = arith.index_cast %arg1 : i32 to index
    %81 = arith.index_cast %79 : i32 to index
    %82 = memref.load %arg2[%80, %81] : memref<2x8xi32, #tpu.memory_space<smem>>
    %83 = arith.index_cast %82 : i32 to index
    %c0_23 = arith.constant 0 : index
    %84 = vector.load %arg3[%83, %c0_23] : memref<64x128xf32, #tpu.memory_space<vmem>>, vector<1x128xf32>
    %85 = arith.index_cast %c6_i32 : i32 to index
    %c0_24 = arith.constant 0 : index
    %86 = vector.load %arg4[%85, %c0_24] : memref<8x128xf32, #tpu.memory_space<vmem>>, vector<1x128xf32>
    %87 = arith.addf %84, %86 : vector<1x128xf32>
    %c0_25 = arith.constant 0 : index
    %88 = arith.index_cast %c6_i32 : i32 to index
    %c0_26 = arith.constant 0 : index
    %89 = vector.load %arg5[%c0_25, %88, %c0_26] : memref<1x8x128xf32, #tpu.memory_space<vmem>>, vector<1x1x128xf32>
    %90 = vector.shape_cast %89 : vector<1x1x128xf32> to vector<1x128xf32>
    %91 = vector.shape_cast %87 : vector<1x128xf32> to vector<1x1x128xf32>
    tpu.vector_store %arg5[%c0_25, %88, %c0_26], %91 {strides = array<i32>} : memref<1x8x128xf32, #tpu.memory_space<vmem>>, vector<1x1x128xf32>,
    %c7_i32 = arith.constant 7 : i32
    %92 = arith.addi %0, %c7_i32 : i32
    %93 = arith.index_cast %arg1 : i32 to index
    %94 = arith.index_cast %92 : i32 to index
    %95 = memref.load %arg2[%93, %94] : memref<2x8xi32, #tpu.memory_space<smem>>
    %96 = arith.index_cast %95 : i32 to index
    %c0_27 = arith.constant 0 : index
    %97 = vector.load %arg3[%96, %c0_27] : memref<64x128xf32, #tpu.memory_space<vmem>>, vector<1x128xf32>
    %98 = arith.index_cast %c7_i32 : i32 to index
    %c0_28 = arith.constant 0 : index
    %99 = vector.load %arg4[%98, %c0_28] : memref<8x128xf32, #tpu.memory_space<vmem>>, vector<1x128xf32>
    %100 = arith.addf %97, %99 : vector<1x128xf32>
    %c0_29 = arith.constant 0 : index
    %101 = arith.index_cast %c7_i32 : i32 to index
    %c0_30 = arith.constant 0 : index
    %102 = vector.load %arg5[%c0_29, %101, %c0_30] : memref<1x8x128xf32, #tpu.memory_space<vmem>>, vector<1x1x128xf32>
    %103 = vector.shape_cast %102 : vector<1x1x128xf32> to vector<1x128xf32>
    %104 = vector.shape_cast %100 : vector<1x128xf32> to vector<1x1x128xf32>
    tpu.vector_store %arg5[%c0_29, %101, %c0_30], %104 {strides = array<i32>} : memref<1x8x128xf32, #tpu.memory_space<vmem>>, vector<1x1x128xf32>,
    %c8_i32_31 = arith.constant 8 : i32
    return
  }
  func.func @transform_0(%arg0: i32, %arg1: i32, %arg2: memref<2x8xi32, #tpu.memory_space<smem>>) -> (i32, i32) {
    %c0_i32 = arith.constant 0 : i32
    %c0_i32_0 = arith.constant 0 : i32
    %c0_i32_1 = arith.constant 0 : i32
    return %c0_i32, %c0_i32_0 : i32, i32
  }
  func.func @transform_1(%arg0: i32, %arg1: i32, %arg2: memref<2x8xi32, #tpu.memory_space<smem>>) -> (i32, i32) {
    %c0_i32 = arith.constant 0 : i32
    %c0_i32_0 = arith.constant 0 : i32
    return %arg0, %c0_i32 : i32, i32
  }
  func.func @transform_2(%arg0: i32, %arg1: i32, %arg2: memref<2x8xi32, #tpu.memory_space<smem>>) -> (i32, i32, i32) {
    %c0_i32 = arith.constant 0 : i32
    %c0_i32_0 = arith.constant 0 : i32
    return %arg1, %arg0, %c0_i32 : i32, i32, i32
  }
}

</mosaic_0001>

<bundles_post_ra>
// kernel: tpu_custom_call.1
= control target key start
LH: loop header
LB: loop body
LE: loop exit
PB: predicated region body
PF: predicated region fallthrough
CT: control target
= control target key end

     0   :  { %s663_s15 = smov [#allocation3]   ;;  %s843_s0 = inlined_call_operand.hbm [shape: s32[2,8], index: 0, kind: input, shape index: {}]   ;;  %s844_s1 = inlined_call_operand.hbm [shape: f32[64,128], index: 1, kind: input, shape index: {}]   ;;  %s845_s2 = inlined_call_operand.hbm [shape: f32[8,128], index: 2, kind: input, shape index: {}]   ;;  %s846_s3 = inlined_call_operand.hbm [shape: f32[2,8,128], index: 3, kind: output, shape index: {}]  }
   0x1   :  { %s9_s14 = sshll.u32 %s843_s0, 4  ;;  %s10_s14 = int_to_ptr.hbm [resolvable:$true] %s9_s14 }
   0x2   :  { %12 = dma.hbm_to_smem %s10_s14, 32, %s663_s15, [#allocation2] }
   0x3   :  { %625 = dma.done.wait [#allocation2], 32 }
   0x4   :  { %626 = vsyncadd [#allocation2], 4294967264 }
   0x5   :  { %15 = sfence }
   0x6   :  { %16 = vsyncpa [#allocation5], 0 }
   0x7   :  { %17 = vsyncpa [#allocation8], 0 }
   0x8   :  { %18 = vsyncpa [#allocation6], 0 }
   0x9   :  { %20 = vsyncpa [#allocation6 + $0x1], 0  ;;  %s691_s16 = smov 0   ;;  %s693_s17 = smov 0  }
   0xa   :  { %s695_s18 = smov 0   ;;  %s697_s19 = smov 0  }
   0xb   :  { %s699_s20 = smov 0   ;;  %s701_s0 = smov 0  }
   0xc LB: > { %s401_s21 = sadd.s32 4294967295, %s661_s0   ;;  %s402_s22 = sadd.s32 4294967294, %s661_s0   ;;  %s661_s0 = sphi %s701_s0, %s26_s0   ;;  %s657_s20 = sphi %s699_s20, %s855_s20   ;;  %s653_s19 = sphi %s697_s19, %s854_s19   ;;  %s649_s18 = sphi %s695_s18, %s853_s18   ;;  %s645_s17 = sphi %s693_s17, %s852_s17   ;;  %s641_s16 = sphi %s691_s16, %s851_s16  }
   0xd   : > { %s35_s23 = sadd.s32 1, %s657_s20  ;;  %s94_s24 = sadd.s32 1, %s649_s18 }
   0xe   : > { %p36_p0 = scmp.ge.s32.totalorder %s35_s23, 2  ;;  %p104_p1 = scmp.ne.s32.totalorder %s649_s18, %s645_s17 }
   0xf   : > { %p105_p2 = scmp.eq.s32.totalorder %s401_s21, 1  ;;  %p110_p3 = scmp.ne.s32.totalorder %s645_s17, %s641_s16 }
  0x10   : > { %s857_s23 = smov (%p36_p0, %s35_s23), 0  ;;  %p111_p5 = scmp.eq.s32.totalorder %s402_s22, 1 }
  0x11   : > { %p731_p4 = por %p105_p2, %p104_p1  ;;  %s89_s26 = ssub.s32 %s657_s20, %s857_s23 }
  0x12   : > { %p403_p6 = scmp.ge.s32.totalorder %s661_s0, 1  ;;  %p92_p7 = scmp.eq.s32.totalorder %s89_s26, 0 }
  0x13   : > { %p738_p8 = por %p111_p5, %p110_p3  ;;  %p118_p9 = scmp.lt.s32.totalorder %s661_s0, 3 }
  0x14   : > { %s744_s28 = scalar_select %p92_p7, %s649_s18, %s94_s24  }
  0x15   : > { %p746_p10 = pnand %p403_p6, %p118_p9  ;;  %p750_p11 = scmp.eq.s32.totalorder %s401_s21, 0 }
  0x16   : > { %s129_s6 = sshll.u32 %s844_s1, 4  ;;  %s664_s7 = smov [#allocation4]   ;;  %s130_s6 = int_to_ptr.hbm [resolvable:$true] %s129_s6 }
  0x17   : > { %p432_p12 = pneg %p746_p10  ;;  %s131_s8 = sshll.u32 %s664_s7, 4  ;;  %s132_s8 = int_to_ptr.vmem [resolvable:$true] %s131_s8 }
  0x18   : > { %s146_s11 = sshll.u32 %s845_s2, 4  ;;  %s665_s12 = smov 128   ;;  %s147_s11 = int_to_ptr.hbm [resolvable:$true] %s146_s11 }
  0x19   : > { %p433_p13 = pnand %p750_p11, %p432_p12  ;;  %s666_s13 = smov 8  }
  0x1a   : > { %s667_s14 = smov [#allocation7]   ;;  %161 = sbr.rel (%p746_p10) target bundleno = 61 (0x3d), region = 28 }
  0x1b   : > { %435 = dma.hbm_to_vmem [thread:$0]  (!%p433_p13), %s130_s6, 1024, %s132_s8, [#allocation5], %s665_s12, %s665_s12, %s666_s13  }
  0x1c   : > { %s148_s15 = sshll.u32 %s667_s14, 4  ;;  %s149_s15 = int_to_ptr.vmem [resolvable:$true] %s148_s15 }
  0x1d   : > { %438 = dma.hbm_to_vmem [thread:$0]  (!%p433_p13), %s147_s11, 128, %s149_s15, [#allocation8]  }
  0x1f   : > { %628 = dma.done.wait (%p750_p11), [#allocation5], 1024  }
  0x20   : > { %630 = vsyncadd (%p750_p11), [#allocation5], 4294966272 }
  0x21   : > { %632 = dma.done.wait (%p750_p11), [#allocation8], 128  }
  0x22   : > { %634 = vsyncadd (%p750_p11), [#allocation8], 4294967168  ;;  %s181_s21 = sand.u32 1, %s645_s17   ;;  %s776_s22 = sshll.u32 %s653_s19, 7  ;;  %v195_v0 = vld [vmem:[#allocation7] sm:$0x1] }
  0x23   : > { %s192_s24 = sld [smem:[#allocation3 + %s776_s22]]  ;;  %s409_s26 = sshll.u32 %s181_s21, 3  ;;  %v209_v3 = vld [vmem:[#allocation7 + $0x1] sm:$0x1]  ;;  %v223_v4 = vld [vmem:[#allocation7 + $0x2] sm:$0x1] }
  0x24   : > { %s205_s29 = sadd.s32 1, %s776_s22  ;;  %s219_s4 = sadd.s32 2, %s776_s22  ;;  %v237_v5 = vld [vmem:[#allocation7 + $0x3] sm:$0x1]  ;;  %v251_v9 = vld [vmem:[#allocation7 + $0x4] sm:$0x1] }
  0x25   : > { %s206_s30 = sld [smem:[#allocation3 + %s205_s29]]  ;;  %s233_s5 = sadd.s32 3, %s776_s22  ;;  %v265_v12 = vld [vmem:[#allocation7 + $0x5] sm:$0x1]  ;;  %v279_v15 = vld [vmem:[#allocation7 + $0x6] sm:$0x1] }
  0x26   : > { %s220_s6 = sld [smem:[#allocation3 + %s219_s4]]  ;;  %s247_s7 = sadd.s32 4, %s776_s22  ;;  %v293_v17 = vld [vmem:[#allocation7 + $0x7] sm:$0x1] }
  0x27   : > { %s234_s8 = sld [smem:[#allocation3 + %s233_s5]]  ;;  %s261_s9 = sadd.s32 5, %s776_s22 }
  0x28   : > { %s248_s10 = sld [smem:[#allocation3 + %s247_s7]]  ;;  %s275_s13 = sadd.s32 6, %s776_s22 }
  0x29   : > { %s193_s11 = scalar_lea.vmem [#allocation4], %s192_s24  ;;  %s786_s12 = sld [smem:[#allocation3 + %s261_s9]] }
  0x2a   : > { %v194_v1 = vld [vmem:[%s193_s11] sm:$0x1]  ;;  %s789_s14 = sld [smem:[#allocation3 + %s275_s13]]  ;;  %s791_s15 = scalar_lea.vmem [#allocation9], %s409_s26 }
  0x2b   : > { %v196_v2 = vadd.f32 %v195_v0, %v194_v1  ;;  %s207_s29 = scalar_lea.vmem [#allocation4], %s206_s30  ;;  %s289_s4 = sadd.s32 7, %s776_s22 }
  0x2c   : > { %v208_v6 = vld [vmem:[%s207_s29] sm:$0x1]  ;;  %s221_s24 = scalar_lea.vmem [#allocation4], %s220_s6  ;;  %s290_s5 = sld [smem:[#allocation3 + %s289_s4]] }
  0x2d   : > { %197 = vst [vmem:[%s791_s15] sm:$0x1] %v196_v2  ;;  %v210_v7 = vadd.f32 %v209_v3, %v208_v6  ;;  %v222_v8 = vld [vmem:[%s221_s24] sm:$0x1]  ;;  %s235_s7 = scalar_lea.vmem [#allocation4], %s234_s8  ;;  %s419_s26 = sshll.u32 %s653_s19, 3 }
  0x2e   : > { %v224_v10 = vadd.f32 %v223_v4, %v222_v8  ;;  %v236_v11 = vld [vmem:[%s235_s7] sm:$0x1]  ;;  %s249_s30 = scalar_lea.vmem [#allocation4], %s248_s10  ;;  %s308_s9 = scalar_lea.hbm %s846_s3, %s419_s26 }
  0x2f   : > { %211 = vst [vmem:[%s791_s15 + $0x1] sm:$0x1] %v210_v7  ;;  %v238_v13 = vadd.f32 %v237_v5, %v236_v11  ;;  %v250_v14 = vld [vmem:[%s249_s30] sm:$0x1]  ;;  %s263_s8 = scalar_lea.vmem [#allocation4], %s786_s12  ;;  %s310_s10 = sshll.u32 %s791_s15, 4  ;;  %s311_s10 = int_to_ptr.vmem [resolvable:$true] %s310_s10 }
  0x30   : > { %225 = vst [vmem:[%s791_s15 + $0x2] sm:$0x1] %v224_v10  ;;  %v252_v16 = vadd.f32 %v251_v9, %v250_v14  ;;  %v264_v18 = vld [vmem:[%s263_s8] sm:$0x1]  ;;  %s277_s19 = scalar_lea.vmem [#allocation4], %s789_s14  ;;  %s312_s11 = sshll.u32 %s308_s9, 4  ;;  %s313_s11 = int_to_ptr.hbm [resolvable:$true] %s312_s11 }
  0x31   : > { %239 = vst [vmem:[%s791_s15 + $0x3] sm:$0x1] %v238_v13  ;;  %v266_v19 = vadd.f32 %v265_v12, %v264_v18  ;;  %v278_v20 = vld [vmem:[%s277_s19] sm:$0x1]  ;;  %s297_s12 = scalar_lea.sflag [#allocation6], %s181_s21  ;;  %s587_s29 = sshra.s32 %s313_s11, 4  ;;  %s588_s29 = int_to_ptr.hbm [resolvable:$true] %s587_s29 }
  0x32   : > { %253 = vst [vmem:[%s791_s15 + $0x4] sm:$0x1] %v252_v16  ;;  %v280_v21 = vadd.f32 %v279_v15, %v278_v20  ;;  %s291_s13 = scalar_lea.vmem [#allocation4], %s290_s5  ;;  %s589_s4 = scalar_lea.hbm %s588_s29, 8 }
  0x33   : > { %267 = vst [vmem:[%s791_s15 + $0x5] sm:$0x1] %v266_v19  ;;  %v292_v22 = vld [vmem:[%s291_s13] sm:$0x1]  ;;  %p590_p0 = scmp.ne.s32.totalorder %s588_s29, %s589_s4  ;;  %s593_s7 = scalar_lea.hbm %s846_s3, 16 }
  0x34   : > { %281 = vst [vmem:[%s791_s15 + $0x6] sm:$0x1] %v280_v21  ;;  %v294_v23 = vadd.f32 %v293_v17, %v292_v22  ;;  %p594_p3 = scmp.lt.s32.totalorder %s588_s29, %s846_s3  ;;  %p595_p5 = scmp.lt.s32.totalorder %s593_s7, %s589_s4 }
  0x35   : > { %p591_p1 = pnand %p590_p0, %p731_p4 }
  0x36   : > { %295 = vst [vmem:[%s791_s15 + $0x7] sm:$0x1] %v294_v23  ;;  %p596_p6 = por %p595_p5, %p594_p3 }
  0x37   : > { %p592_p2 = pneg %p591_p1 }
  0x39   : > { %p597_p7 = pnand %p596_p6, %p592_p2 }
  0x3b   : > { %600 = shalt.err (!%p597_p7)
}
  0x3c   : > { %430 = dma.vmem_to_hbm [thread:$0]  (%p731_p4), %s311_s10, 128, %s313_s11, %s297_s12  }
  0x3d PF: > { %p447_p9 = scmp.ge.s32.totalorder %s661_s0, 2  ;;  %s324_s21 = sand.u32 1, %s641_s16  }
  0x3e   : > { %s325_s15 = scalar_lea.sflag [#allocation6], %s324_s21 }
  0x3f   : > { %p440_p10 = pnand %p447_p9, %p738_p8 }
  0x41   : > { %p441_p11 = pneg %p440_p10 }
  0x43   : > { %636 = dma.done.wait (%p441_p11), %s325_s15, 128  }
  0x44   : > { %638 = vsyncadd (%p441_p11), %s325_s15, 4294967168  ;;  %s26_s0 = sadd.s32 1, %s661_s0   ;;  %s851_s16 = smov %s645_s17 }
  0x45   : > { %p23_p12 = scmp.ge.s32.totalorder %s26_s0, 4   ;;  %s852_s17 = smov %s649_s18 }
  0x46   : > { %s853_s18 = smov %s744_s28  ;;  %s854_s19 = smov %s657_s20 }
  0x47   : > { %s855_s20 = smov %s857_s23  ;;  %25 = sbr.rel (!%p23_p12) target bundleno = 12 (0xc), region = 78 }
  0x4c   :  { %331 = vsyncpa [#allocation5], 1 }
  0x4d   :  { %333 = vsyncpa [#allocation5 + $0x1], 1 }
  0x4e   :  { %334 = vsyncpa [#allocation8], 1 }
  0x4f   :  { %335 = vsyncpa [#allocation6], 1 }
  0x50   :  { %337 = vsyncpa [#allocation6 + $0x1], 1 }

</bundles_post_ra>
